<compile_context>
chip_gen: v7x
topology: tpu7x:2x2x1
jax: 0.10.0
libtpu: 0.0.40
codegen_flags: <defaults>
</compile_context>

<pallas_src>
import functools

import jax
import jax.numpy as jnp
from jax.experimental import pallas as pl
from jax.experimental.pallas import tpu as pltpu


# ------------------------------ small helpers --------------------------------

def _pick_block_rows(Ho, Wo, target_m=512):
    """Largest divisor bh of Ho with bh*Wo <= target_m (>=1)."""
    best = 1
    for bh in range(1, Ho + 1):
        if Ho % bh == 0 and bh * Wo <= target_m:
            best = bh
    return best


def _pick_chunk(C, gw, target=128):
    """Largest multiple of gw that divides C and is <= target (MXU K/N width).

    128 is safe on every generation (v6e/v7x could use 256)."""
    if C <= target:
        return C
    best = gw
    c = gw
    while c <= target:
        if C % c == 0:
            best = c
        c += gw
    return best


# --------------------------- conv-a: 1x1 + BN + ReLU -------------------------

def _mm_bias_act_kernel(x_ref, w_ref, b_ref, o_ref, *, act):
    y = jnp.dot(x_ref[...], w_ref[...], preferred_element_type=jnp.float32)
    y = y + b_ref[...]
    if act == "relu":
        y = jnp.maximum(y, 0.0)
    o_ref[...] = y.astype(o_ref.dtype)


def matmul_bias_act(x, w, bias, *, act="none", block_m=512,
                    out_dtype=jnp.float32):
    """(x @ w) + bias (+ activation).  BN scale is pre-folded into w."""
    M, K = x.shape
    K2, N = w.shape
    assert K == K2
    bm = M if M < block_m else block_m          # tail block handled by masking
    kernel = functools.partial(_mm_bias_act_kernel, act=act)
    return pl.pallas_call(
        kernel,
        out_shape=jax.ShapeDtypeStruct((M, N), out_dtype),
        grid=(pl.cdiv(M, bm),),
        in_specs=[
            pl.BlockSpec((bm, K), lambda i: (i, 0)),
            pl.BlockSpec((K, N), lambda i: (0, 0)),
            pl.BlockSpec((1, N), lambda i: (0, 0)),
        ],
        out_specs=pl.BlockSpec((bm, N), lambda i: (i, 0)),
        compiler_params=pltpu.CompilerParams(
            dimension_semantics=("parallel",),
            vmem_limit_bytes=64 * 1024 * 1024),
    )(x, w, bias.reshape(1, N))


# ---- conv-b: grouped 3x3 + BN + ReLU + SE (avgpool + FC + ReLU + FC + sig) ---

def _convb_se_kernel(xa_ref, w_ref, b_ref, w1_ref, b1_ref, w2_ref, b2_ref,
                     y_ref, gate_ref, pad_ref, pacc_ref,
                     *, stride, block_ho, Wo, chunk, n_chunks, inv_hw):
    hb = pl.program_id(1)
    H = xa_ref.shape[1]
    W = xa_ref.shape[2]
    C = xa_ref.shape[3]

    # Once per batch element (xa block index is constant along hb, so it is
    # DMA'd once and stays resident): zero-pad into VMEM scratch and reset the
    # SE pooling accumulator.  This replaces the jnp.pad HBM round trip.
    @pl.when(hb == 0)
    def _():
        pad_ref[...] = jnp.zeros_like(pad_ref)
        pad_ref[1:H + 1, 1:W + 1, :] = xa_ref[0]
        pacc_ref[...] = jnp.zeros_like(pacc_ref)

    M = block_ho * Wo
    nrows = (block_ho - 1) * stride + 3
    row0 = hb * (block_ho * stride)
    slab = pad_ref[pl.ds(row0, nrows), :, :]            # (nrows, Wp, C)

    # The 9 tap patches (shared across channel chunks).  Stride handling is
    # done with static value slices (lax.slice with strides), which lowers on
    # Mosaic and in interpret mode; strided pl.ds on a Ref does not interpret.
    patches = []
    for ky in range(3):
        rows = slab[ky:ky + (block_ho - 1) * stride + 1:stride]     # (bho, Wp, C)
        for kx in range(3):
            p = rows[:, kx:kx + (Wo - 1) * stride + 1:stride, :]    # (bho, Wo, C)
            patches.append(p.reshape(M, C))

    bias = b_ref[...]                                   # (1, C) f32
    pool_parts = []
    for c in range(n_chunks):
        lo = c * chunk
        acc = jnp.zeros((M, chunk), jnp.float32)
        for t in range(9):                              # dense block-diag matmuls
            acc = acc + jnp.dot(patches[t][:, lo:lo + chunk], w_ref[t, c],
                                preferred_element_type=jnp.float32)
        yc = jnp.maximum(acc + bias[:, lo:lo + chunk], 0.0)         # BN + ReLU
        y_ref[0, :, :, lo:lo + chunk] = (
            yc.reshape(block_ho, Wo, chunk).astype(y_ref.dtype))
        pool_parts.append(jnp.sum(yc, axis=0, keepdims=True))       # (1, chunk)

    psum = pool_parts[0] if n_chunks == 1 else jnp.concatenate(pool_parts, 1)
    pacc_ref[...] += psum       # relies on hb being the innermost, sequential
                                # ("arbitrary") grid axis and pacc being
                                # private per core (n is the parallel axis).

    # SE excitation fused into the last Ho-block: avgpool -> FC -> ReLU -> FC
    # -> sigmoid, written once per batch element.
    @pl.when(hb == pl.num_programs(1) - 1)
    def _():
        pooled = pacc_ref[...] * inv_hw                              # (1, C)
        s = jnp.dot(pooled, w1_ref[...], preferred_element_type=jnp.float32)
        s = jnp.maximum(s + b1_ref[...], 0.0)
        g = jnp.dot(s, w2_ref[...], preferred_element_type=jnp.float32)
        gate_ref[0] = jax.nn.sigmoid(g + b2_ref[...]).astype(gate_ref.dtype)


def convb_se(xa, w9, bias, se_w1, se_b1, se_w2, se_b2, *, stride, Ho, Wo,
             chunk, target_m=512, out_dtype=jnp.float32):
    """xa: (N, H, W, C); w9: (9, n_chunks, chunk, chunk) block-diag packed."""
    N, H, W, C = xa.shape
    n_chunks = C // chunk
    bh = _pick_block_rows(Ho, Wo, target_m)
    n_hb = Ho // bh
    Hp, Wp = H + 2, W + 2
    w_se = se_w1.shape[1]

    kernel = functools.partial(
        _convb_se_kernel, stride=stride, block_ho=bh, Wo=Wo, chunk=chunk,
        n_chunks=n_chunks, inv_hw=1.0 / float(Ho * Wo))

    y, gate = pl.pallas_call(
        kernel,
        out_shape=(jax.ShapeDtypeStruct((N, Ho, Wo, C), out_dtype),
                   jax.ShapeDtypeStruct((N, 1, C), jnp.float32)),
        grid=(N, n_hb),
        in_specs=[
            pl.BlockSpec((1, H, W, C), lambda n, hb: (n, 0, 0, 0)),   # resident
            pl.BlockSpec(w9.shape, lambda n, hb: (0, 0, 0, 0)),
            pl.BlockSpec((1, C), lambda n, hb: (0, 0)),
            pl.BlockSpec((C, w_se), lambda n, hb: (0, 0)),
            pl.BlockSpec((1, w_se), lambda n, hb: (0, 0)),
            pl.BlockSpec((w_se, C), lambda n, hb: (0, 0)),
            pl.BlockSpec((1, C), lambda n, hb: (0, 0)),
        ],
        out_specs=(pl.BlockSpec((1, bh, Wo, C), lambda n, hb: (n, hb, 0, 0)),
                   pl.BlockSpec((1, 1, C), lambda n, hb: (n, 0, 0))),
        scratch_shapes=[pltpu.VMEM((Hp, Wp, C), xa.dtype),     # padded image
                        pltpu.VMEM((1, C), jnp.float32)],      # SE pool acc
        compiler_params=pltpu.CompilerParams(
            dimension_semantics=("parallel", "arbitrary"),
            vmem_limit_bytes=64 * 1024 * 1024),
    )(xa, w9, bias.reshape(1, C), se_w1, se_b1.reshape(1, w_se),
      se_w2, se_b2.reshape(1, C))
    return y, gate


# ---- tail: SE scale + 1x1 conv-c + BN + shortcut (+proj BN) + add + ReLU -----

def _tail_proj_kernel(xb_ref, g_ref, xs_ref, w_ref, b_ref, o_ref,
                      *, stride, bho, Wo):
    C = xb_ref.shape[3]
    M = bho * Wo
    xse = xb_ref[0].reshape(M, C).astype(jnp.float32) * g_ref[0]    # SE gate
    xs = xs_ref[0]                                        # (bho*stride, W, Cs)
    xs = xs[::stride, :(Wo - 1) * stride + 1:stride, :]   # strided shortcut
    xs = xs.reshape(M, xs.shape[-1]).astype(jnp.float32)
    # conv-c and the projection conv fused into a single K-concatenated matmul.
    xcat = jnp.concatenate([xse, xs], axis=1).astype(w_ref.dtype)
    y = jnp.dot(xcat, w_ref[...], preferred_element_type=jnp.float32)
    y = jnp.maximum(y + b_ref[...], 0.0)
    o_ref[0] = y.reshape(bho, Wo, -1).astype(o_ref.dtype)


def _tail_id_kernel(xb_ref, g_ref, xs_ref, w_ref, b_ref, o_ref, *, bho, Wo):
    C = xb_ref.shape[3]
    M = bho * Wo
    xse = xb_ref[0].reshape(M, C).astype(jnp.float32) * g_ref[0]
    y = jnp.dot(xse.astype(w_ref.dtype), w_ref[...],
                preferred_element_type=jnp.float32) + b_ref[...]
    y = y + xs_ref[0].reshape(M, -1).astype(jnp.float32)
    o_ref[0] = jnp.maximum(y, 0.0).reshape(bho, Wo, -1).astype(o_ref.dtype)


def fused_tail(xb, gate, xs, w, bias, *, stride, proj, target_m=512,
               out_dtype=jnp.float32):
    """xb: (N, Ho, Wo, C); gate: (N, 1, C); xs: original input (N, H, W, Cs)."""
    N, Ho, Wo, C = xb.shape
    Cs = xs.shape[-1]
    w_out = w.shape[1]
    bh = _pick_block_rows(Ho, Wo, target_m)
    n_hb = Ho // bh

    if proj:
        kernel = functools.partial(_tail_proj_kernel, stride=stride, bho=bh,
                                   Wo=Wo)
        xs_spec = pl.BlockSpec((1, bh * stride, xs.shape[2], Cs),
                               lambda n, hb: (n, hb, 0, 0))
    else:
        kernel = functools.partial(_tail_id_kernel, bho=bh, Wo=Wo)
        xs_spec = pl.BlockSpec((1, bh, Wo, Cs), lambda n, hb: (n, hb, 0, 0))

    return pl.pallas_call(
        kernel,
        out_shape=jax.ShapeDtypeStruct((N, Ho, Wo, w_out), out_dtype),
        grid=(N, n_hb),
        in_specs=[
            pl.BlockSpec((1, bh, Wo, C), lambda n, hb: (n, hb, 0, 0)),
            pl.BlockSpec((1, 1, C), lambda n, hb: (n, 0, 0)),
            xs_spec,
            pl.BlockSpec(w.shape, lambda n, hb: (0, 0)),
            pl.BlockSpec((1, w_out), lambda n, hb: (0, 0)),
        ],
        out_specs=pl.BlockSpec((1, bh, Wo, w_out), lambda n, hb: (n, hb, 0, 0)),
        compiler_params=pltpu.CompilerParams(
            dimension_semantics=("parallel", "parallel"),
            vmem_limit_bytes=64 * 1024 * 1024),
    )(xb, gate, xs, w, bias.reshape(1, w_out))


# ------------------------------ parameter prep -------------------------------

def fold_bn(b, eps):
    scale = b["gamma"] / jnp.sqrt(b["var"] + eps)
    return scale, b["beta"] - b["mean"] * scale


def fold_1x1(w, scale, dtype):
    """torch (Cout, Cin) 1x1 weight -> (Cin, Cout) with BN scale folded in."""
    return (w * scale[:, None]).T.astype(dtype)


def pack_grouped_weight(w_g, scale, chunk, dtype):
    """torch grouped (C, C/g, 3, 3) -> (9, n_chunks, chunk, chunk), block-diag.

    `chunk // gw` groups are packed per MXU-width chunk so each tap is a dense
    (M, chunk) @ (chunk, chunk) matmul (zero MACs in the systolic array are
    free; MXU pushes / weight loads are not).  BN scale folded into outputs."""
    C, gw, kh, kw = w_g.shape
    gpc = chunk // gw                         # groups per chunk
    n_chunks = C // chunk
    w = w_g * scale[:, None, None, None]
    w = w.reshape(n_chunks, gpc, gw, gw, kh, kw)        # (nc, g, co, ci, ky, kx)
    w = jnp.transpose(w, (4, 5, 0, 1, 3, 2))            # (ky, kx, nc, g, ci, co)
    eye = jnp.eye(gpc, dtype=w.dtype)
    w = jnp.einsum("hwngio,gp->hwngipo", w, eye)        # zero off-group blocks
    return w.reshape(kh * kw, n_chunks, chunk, chunk).astype(dtype)


# ------------------------------- block forward -------------------------------

def res_bottleneck_block(x_nhwc, p, *, stride, groups, eps=1e-5,
                         block_m=512, compute_dtype=jnp.float32):
    N, H, W, Cin = x_nhwc.shape
    w_b = p["w_a"].shape[0]
    w_out = p["w_c"].shape[0]
    proj_block = (Cin != w_out) or (stride != 1)
    Ho = (H - 1) // stride + 1
    Wo = (W - 1) // stride + 1

    xin = x_nhwc.astype(compute_dtype)

    # a: 1x1 conv + BN + ReLU (dtype-consistent output, no extra cast pass)
    sa, ba = fold_bn(p["a_bn"], eps)
    xa = matmul_bias_act(xin.reshape(N * H * W, Cin),
                         fold_1x1(p["w_a"], sa, compute_dtype), ba,
                         act="relu", block_m=block_m, out_dtype=compute_dtype)
    xa = xa.reshape(N, H, W, w_b)

    # b: grouped 3x3 + BN + ReLU, with SE pool + excitation fused (no jnp.pad)
    sb, bb = fold_bn(p["b_bn"], eps)
    gw = w_b // groups
    chunk = _pick_chunk(w_b, gw, target=128)
    wb = pack_grouped_weight(p["w_b3"], sb, chunk, compute_dtype)
    xb, gate = convb_se(xa, wb, bb,
                        p["se_w1"].T.astype(jnp.float32), p["se_b1"],
                        p["se_w2"].T.astype(jnp.float32), p["se_b2"],
                        stride=stride, Ho=Ho, Wo=Wo, chunk=chunk,
                        out_dtype=compute_dtype)

    # tail: SE scale + conv-c + BN + shortcut (+proj conv + BN) + add + ReLU
    sc, bc = fold_bn(p["c_bn"], eps)
    wc = fold_1x1(p["w_c"], sc, compute_dtype)
    if proj_block:
        sp, bp = fold_bn(p["proj_bn"], eps)
        wp = fold_1x1(p["w_proj"], sp, compute_dtype)
        wcat = jnp.concatenate([wc, wp], axis=0)        # (w_b + Cin, w_out)
        out = fused_tail(xb, gate, xin, wcat, bc + bp, stride=stride,
                         proj=True, out_dtype=compute_dtype)
    else:
        out = fused_tail(xb, gate, xin, wc, bc, stride=1, proj=False,
                         out_dtype=compute_dtype)
    return out


# ----------------------------- pure-JAX reference ----------------------------

def ref_res_bottleneck_block(x, p, *, stride, groups, eps=1e-5):
    P = jax.lax.Precision.HIGHEST
    conv1x1 = lambda v, w: jnp.einsum("nhwi,oi->nhwo", v, w, precision=P)
    bn = lambda v, b: (v - b["mean"]) / jnp.sqrt(b["var"] + eps) * b["gamma"] + b["beta"]
    relu = lambda v: jnp.maximum(v, 0.0)

    xa = relu(bn(conv1x1(x, p["w_a"]), p["a_bn"]))
    rhs = jnp.transpose(p["w_b3"], (2, 3, 1, 0))
    xb = jax.lax.conv_general_dilated(
        xa, rhs, window_strides=(stride, stride), padding=((1, 1), (1, 1)),
        dimension_numbers=("NHWC", "HWIO", "NHWC"),
        feature_group_count=groups, precision=P)
    xb = relu(bn(xb, p["b_bn"]))
    pooled = jnp.mean(xb, axis=(1, 2))
    s = relu(jnp.einsum("nc,oc->no", pooled, p["se_w1"], precision=P) + p["se_b1"])
    s = jax.nn.sigmoid(jnp.einsum("nc,oc->no", s, p["se_w2"], precision=P) + p["se_b2"])
    xse = xb * s[:, None, None, :]
    xc = bn(conv1x1(xse, p["w_c"]), p["c_bn"])
    if x.shape[-1] != xc.shape[-1] or stride != 1:
        short = bn(conv1x1(x[:, ::stride, ::stride, :], p["w_proj"]), p["proj_bn"])
    else:
        short = x
    return relu(short + xc)


# ---------------------------------- params -----------------------------------

def bn_params(key, c):
    k1, k2, k3, k4 = jax.random.split(key, 4)
    return {
        "gamma": jax.random.uniform(k1, (c,), jnp.float32, 0.5, 1.5),
        "beta": 0.1 * jax.random.normal(k2, (c,), jnp.float32),
        "mean": 0.1 * jax.random.normal(k3, (c,), jnp.float32),
        "var": jax.random.uniform(k4, (c,), jnp.float32, 0.5, 1.5),
    }


def init_params(key, w_in, w_out, bm_ratio, gw, se_r):
    w_b = int(round(w_out * bm_ratio))
    g = w_b // gw
    w_se = int(round(w_in * se_r))
    ks = jax.random.split(key, 12)
    p = {
        "w_a": 0.1 * jax.random.normal(ks[0], (w_b, w_in), jnp.float32),
        "a_bn": bn_params(ks[1], w_b),
        "w_b3": 0.1 * jax.random.normal(ks[2], (w_b, w_b // g, 3, 3), jnp.float32),
        "b_bn": bn_params(ks[3], w_b),
        "se_w1": 0.1 * jax.random.normal(ks[4], (w_se, w_b), jnp.float32),
        "se_b1": 0.1 * jax.random.normal(ks[5], (w_se,), jnp.float32),
        "se_w2": 0.1 * jax.random.normal(ks[6], (w_b, w_se), jnp.float32),
        "se_b2": 0.1 * jax.random.normal(ks[7], (w_b,), jnp.float32),
        "w_c": 0.1 * jax.random.normal(ks[8], (w_out, w_b), jnp.float32),
        "c_bn": bn_params(ks[9], w_out),
        "w_proj": 0.1 * jax.random.normal(ks[10], (w_out, w_in), jnp.float32),
        "proj_bn": bn_params(ks[11], w_out),
    }
    return p, g


# ------------------------------------ main ------------------------------------

if __name__ == "__main__":
    eps = 1e-5
    key = jax.random.PRNGKey(0)

    # Test 1: projection block (stride 2, w_in != w_out) -- stage transition.
    k1, k2, key = jax.random.split(key, 3)
    w_in, w_out, stride, bm_ratio, gw, se_r = 8, 16, 2, 1.0, 4, 0.5
    params, groups = init_params(k2, w_in, w_out, bm_ratio, gw, se_r)
    x_nchw = jax.random.normal(k1, (2, w_in, 16, 16), jnp.float32)   # NCHW
    x_nhwc = jnp.transpose(x_nchw, (0, 2, 3, 1))
    out = jax.block_until_ready(
        res_bottleneck_block(x_nhwc, params, stride=stride, groups=groups,
                             eps=eps))
    ref = ref_res_bottleneck_block(x_nhwc, params, stride=stride,
                                   groups=groups, eps=eps)
    assert out.shape == ref.shape, (out.shape, ref.shape)
    assert bool(jnp.allclose(out, ref, atol=2e-2, rtol=2e-2)), "proj mismatch"

    # Test 2: identity block (stride 1, w_in == w_out).
    k3, k4, key = jax.random.split(key, 3)
    params2, groups2 = init_params(k4, 16, 16, 1.0, 4, 0.5)
    x2 = jnp.transpose(jax.random.normal(k3, (2, 16, 8, 8), jnp.float32),
                       (0, 2, 3, 1))
    out2 = jax.block_until_ready(
        res_bottleneck_block(x2, params2, stride=1, groups=groups2, eps=eps))
    ref2 = ref_res_bottleneck_block(x2, params2, stride=1, groups=groups2,
                                    eps=eps)
    assert out2.shape == ref2.shape, (out2.shape, ref2.shape)
    assert bool(jnp.allclose(out2, ref2, atol=2e-2, rtol=2e-2)), "id mismatch"

    print("KERNEL_OK")
</pallas_src>

<mosaic_0001>
module attributes {stable_mosaic.version = 11 : i64} {
  func.func @_mm_bias_act_kernel(%arg0: i32, %arg1: memref<512x8xf32, #tpu.memory_space<vmem>>, %arg2: memref<8x16xf32, #tpu.memory_space<vmem>>, %arg3: memref<1x16xf32, #tpu.memory_space<vmem>>, %arg4: memref<512x16xf32, #tpu.memory_space<vmem>>) attributes {dimension_semantics = [#tpu.dimension_semantics<parallel>], iteration_bounds = array<i64: 1>, scalar_prefetch = 0 : i64, scratch_operands = 0 : i64, tpu.core_type = #tpu.core_type<tc>, window_params = [{transform_indices = @transform_0, window_bounds = array<i64: 512, 8>}, {pipeline_mode = #tpu.pipeline_mode<synchronous>, transform_indices = @transform_1, window_bounds = array<i64: 8, 16>}, {pipeline_mode = #tpu.pipeline_mode<synchronous>, transform_indices = @transform_2, window_bounds = array<i64: 1, 16>}, {transform_indices = @transform_3, window_bounds = array<i64: 512, 16>}]} {
    %c0 = arith.constant 0 : index
    %c0_0 = arith.constant 0 : index
    %0 = vector.load %arg1[%c0, %c0_0] : memref<512x8xf32, #tpu.memory_space<vmem>>, vector<512x8xf32>
    %c0_1 = arith.constant 0 : index
    %c0_2 = arith.constant 0 : index
    %1 = vector.load %arg2[%c0_1, %c0_2] : memref<8x16xf32, #tpu.memory_space<vmem>>, vector<8x16xf32>
    %cst = arith.constant dense<0.000000e+00> : vector<512x16xf32>
    %2 = tpu.matmul %0, %1, %cst {dimension_numbers = #tpu.dot_dimension_numbers<[1], [0], [0], [1], [0, 0, 1, 1], [], []>} : vector<512x8xf32>, vector<8x16xf32>, vector<512x16xf32> -> vector<512x16xf32>
    %c0_3 = arith.constant 0 : index
    %c0_4 = arith.constant 0 : index
    %3 = vector.load %arg3[%c0_3, %c0_4] : memref<1x16xf32, #tpu.memory_space<vmem>>, vector<1x16xf32>
    %4 = vector.broadcast %3 : vector<1x16xf32> to vector<512x16xf32>
    %5 = arith.addf %2, %4 : vector<512x16xf32>
    %cst_5 = arith.constant 0.000000e+00 : f32
    %6 = vector.broadcast %cst_5 : f32 to vector<512x16xf32>
    %7 = arith.maximumf %5, %6 : vector<512x16xf32>
    %c0_6 = arith.constant 0 : index
    %c0_7 = arith.constant 0 : index
    %8 = vector.load %arg4[%c0_6, %c0_7] : memref<512x16xf32, #tpu.memory_space<vmem>>, vector<512x16xf32>
    tpu.vector_store %arg4[%c0_6, %c0_7], %7 {strides = array<i32>} : memref<512x16xf32, #tpu.memory_space<vmem>>, vector<512x16xf32>,
    return
  }
  func.func @transform_0(%arg0: i32) -> (i32, i32) {
    %c0_i32 = arith.constant 0 : i32
    %c0_i32_0 = arith.constant 0 : i32
    return %arg0, %c0_i32 : i32, i32
  }
  func.func @transform_1(%arg0: i32) -> (i32, i32) {
    %c0_i32 = arith.constant 0 : i32
    %c0_i32_0 = arith.constant 0 : i32
    %c0_i32_1 = arith.constant 0 : i32
    return %c0_i32, %c0_i32_0 : i32, i32
  }
  func.func @transform_2(%arg0: i32) -> (i32, i32) {
    %c0_i32 = arith.constant 0 : i32
    %c0_i32_0 = arith.constant 0 : i32
    %c0_i32_1 = arith.constant 0 : i32
    return %c0_i32, %c0_i32_0 : i32, i32
  }
  func.func @transform_3(%arg0: i32) -> (i32, i32) {
    %c0_i32 = arith.constant 0 : i32
    %c0_i32_0 = arith.constant 0 : i32
    return %arg0, %c0_i32 : i32, i32
  }
}

</mosaic_0001>

<bundles_post_ra>
// kernel: tpu_custom_call.1
= control target key start
LH: loop header
LB: loop body
LE: loop exit
PB: predicated region body
PF: predicated region fallthrough
CT: control target
= control target key end

     0   :  { %8 = vsyncpa [#allocation3], 0  ;;  %s1460_s0 = inlined_call_operand.hbm [shape: f32[512,8], index: 0, kind: input, shape index: {}]   ;;  %s1461_s1 = inlined_call_operand.hbm [shape: f32[8,16], index: 1, kind: input, shape index: {}]   ;;  %s1462_s2 = inlined_call_operand.hbm [shape: f32[1,16], index: 2, kind: input, shape index: {}]   ;;  %s1463_s3 = inlined_call_operand.hbm [shape: f32[512,16], index: 3, kind: output, shape index: {}]  }
   0x1   :  { %9 = vsyncpa [#allocation6], 0 }
   0x2   :  { %10 = vsyncpa [#allocation4], 0  ;;  %s1179_s12 = smov [#allocation5]   ;;  %s1180_s14 = smov [#allocation2]  }
   0x3   :  { %s29_s13 = sshll.u32 %s1179_s12, 4  ;;  %s16_s15 = sshll.u32 %s1180_s14, 4  ;;  %s30_s13 = int_to_ptr.vmem [resolvable:$true] %s29_s13  ;;  %s1205_s15 = int_to_ptr.vmem [resolvable:$true] %s16_s15 }
   0x4   :  { %s1085_s18 = scalar_lea.hbm %s1461_s1, 128 }
   0x5   :  { %p1086_p0 = scmp.ne.s32.totalorder %s1461_s1, %s1085_s18  ;;  %p1089_p1 = scmp.lt.u32.totalorder %s1085_s18, %s1461_s1 }
   0x7   :  { %p1091_p2 = pnand %p1089_p1, %p1086_p0 }
   0x9   :  { %1094 = shalt.err (!%p1091_p2)
}
   0xa   :  { %s1095_s23 = scalar_lea.vmem %s30_s13, 128  ;;  %p1100_p4 = scmp.lt.s32.totalorder %s30_s13, %s30_s13 }
   0xb   :  { %p1096_p3 = scmp.ne.s32.totalorder %s30_s13, %s1095_s23  ;;  %p1101_p5 = scmp.lt.s32.totalorder %s1095_s23, %s1095_s23 }
   0xd   :  { %p1102_p6 = por %p1101_p5, %p1100_p4 }
   0xf   :  { %p1103_p7 = pnand %p1102_p6, %p1096_p3 }
  0x11   :  { %1106 = shalt.err (!%p1103_p7)
}
  0x12   :  { %32 = dma.hbm_to_vmem [thread:$0]  %s1461_s1, 128, %s30_s13, [#allocation6]  }
  0x13   :  { %s1107_s28 = scalar_lea.hbm %s1460_s0, 8192 }
  0x14   :  { %p1108_p8 = scmp.ne.s32.totalorder %s1460_s0, %s1107_s28  ;;  %p1111_p9 = scmp.lt.u32.totalorder %s1107_s28, %s1460_s0 }
  0x16   :  { %p1113_p10 = pnand %p1111_p9, %p1108_p8 }
  0x18   :  { %1116 = shalt.err (!%p1113_p10)
}
  0x19   :  { %s1117_s6 = scalar_lea.vmem %s1205_s15, 8192  ;;  %p1122_p12 = scmp.lt.s32.totalorder %s1205_s15, %s1205_s15 }
  0x1a   :  { %p1118_p11 = scmp.ne.s32.totalorder %s1205_s15, %s1117_s6  ;;  %p1123_p13 = scmp.lt.s32.totalorder %s1117_s6, %s1117_s6 }
  0x1c   :  { %p1124_p0 = por %p1123_p13, %p1122_p12 }
  0x1e   :  { %p1125_p1 = pnand %p1124_p0, %p1118_p11 }
  0x20   :  { %1128 = shalt.err (!%p1125_p1)
}
  0x21   :  { %s1181_s1 = smov 128   ;;  %s1182_s7 = smov 8  }
  0x22   :  { %22 = dma.hbm_to_vmem [thread:$0]  %s1460_s0, 8192, %s1205_s15, [#allocation3], %s1181_s1, %s1181_s1, %s1182_s7  }
  0x23   :  { %s1183_s10 = smov [#allocation7]   ;;  %s1129_s14 = scalar_lea.hbm %s1462_s2, 16 }
  0x24   :  { %s39_s11 = sshll.u32 %s1183_s10, 4  ;;  %p1130_p2 = scmp.ne.s32.totalorder %s1462_s2, %s1129_s14  ;;  %s40_s11 = int_to_ptr.vmem [resolvable:$true] %s39_s11 }
  0x25   :  { %p1133_p3 = scmp.lt.u32.totalorder %s1129_s14, %s1462_s2 }
  0x27   :  { %p1135_p4 = pnand %p1133_p3, %p1130_p2 }
  0x29   :  { %1138 = shalt.err (!%p1135_p4)
}
  0x2a   :  { %s1139_s20 = scalar_lea.vmem %s40_s11, 16  ;;  %s1143_s0 = scalar_lea.vmem %s40_s11, 32 }
  0x2b   :  { %p1140_p5 = scmp.ne.s32.totalorder %s40_s11, %s1139_s20  ;;  %p1144_p6 = scmp.lt.s32.totalorder %s40_s11, %s40_s11 }
  0x2c   :  { %p1145_p7 = scmp.lt.s32.totalorder %s1143_s0, %s1139_s20 }
  0x2e   :  { %p1146_p8 = por %p1145_p7, %p1144_p6 }
  0x30   :  { %p1147_p9 = pnand %p1146_p8, %p1140_p5 }
  0x32   :  { %1150 = shalt.err (!%p1147_p9)
}
  0x33   :  { %42 = dma.hbm_to_vmem [thread:$0]  %s1462_s2, 16, %s40_s11, [#allocation6]  }
  0x34   :  { %1173 = dma.done.wait [#allocation3], 8192  }
  0x35   :  { %1174 = vsyncadd [#allocation3], 4294959104 }
  0x36   :  { %1175 = dma.done.wait [#allocation6], 144  }
  0x37   :  { %1176 = vsyncadd [#allocation6], 4294967152  ;;  %v116_v0 = vld [vmem:[#allocation5] sm:$0xff]  ;;  %vm124_vm0 = vcmask 64512   ;;  %v53_v3 = vld [vmem:[#allocation2 + $0x8] sm:$0xff]  ;;  %vm766_vm1 = vcmask 130048  }
  0x38   :  { %v52_v1 = vld [vmem:[#allocation2] sm:$0xff]  ;;  %979 = vmatprep.subr.mxu0 %v116_v0  ;;  %1077 = vmatprep.subr.mxu1 %v116_v0  ;;  %v85_v4 = vld [vmem:[#allocation2 + $0x108] sm:$0xff]  ;;  %v54_v5 = vld [vmem:[#allocation2 + $0x10] sm:$0xff]  ;;  %s1184_s2 = smov [#allocation8]  }
  0x39   :  { %v84_v2 = vld [vmem:[#allocation2 + $0x100] sm:$0xff]  ;;  %980 = vmatpush3.msra.mxu0 %v116_v0  ;;  %1078 = vmatpush3.msra.mxu1 %v116_v0  ;;  %v86_v6 = vld [vmem:[#allocation2 + $0x110] sm:$0xff]  ;;  %v55_v7 = vld [vmem:[#allocation2 + $0x18] sm:$0xff]  ;;  %s836_s22 = sshll.u32 %s1184_s2, 4  ;;  %s837_s22 = int_to_ptr.vmem [resolvable:$true] %s836_s22 }
  0x3a   :  { %981 = vmatprep.mubr.msk.f32.mxu0 %vm124_vm0, %v52_v1  ;;  %1029 = vmatprep.mubr.msk.f32.mxu1 %vm124_vm0, %v84_v2  ;;  %v87_v8 = vld [vmem:[#allocation2 + $0x118] sm:$0xff]  ;;  %v56_v9 = vld [vmem:[#allocation2 + $0x20] sm:$0xff]  ;;  %v57_v11 = vld [vmem:[#allocation2 + $0x28] sm:$0xff]  ;;  %s1151_s23 = scalar_lea.vmem %s837_s22, 8192  ;;  %p1156_p11 = scmp.lt.s32.totalorder %s837_s22, %s837_s22 }
  0x3b   :  { %982 = vmatmul.mubr.msk.f32.vlgmr.msra.gmra.mrb[0].mxu0 %vm124_vm0, %v53_v3  ;;  %1030 = vmatmul.mubr.msk.f32.vlgmr.msra.gmra.mrb[0].mxu1 %vm124_vm0, %v85_v4  ;;  %v88_v10 = vld [vmem:[#allocation2 + $0x120] sm:$0xff]  ;;  %v89_v12 = vld [vmem:[#allocation2 + $0x128] sm:$0xff]  ;;  %v58_v13 = vld [vmem:[#allocation2 + $0x30] sm:$0xff]  ;;  %p1152_p10 = scmp.ne.s32.totalorder %s837_s22, %s1151_s23  ;;  %p1157_p12 = scmp.lt.s32.totalorder %s1151_s23, %s1151_s23 }
  0x3c   :  { %984 = vmatprep.mubr.msk.f32.mxu0 %vm124_vm0, %v54_v5  ;;  %1032 = vmatprep.mubr.msk.f32.mxu1 %vm124_vm0, %v86_v6  ;;  %v90_v14 = vld [vmem:[#allocation2 + $0x130] sm:$0xff]  ;;  %v59_v15 = vld [vmem:[#allocation2 + $0x38] sm:$0xff]  ;;  %v60_v17 = vld [vmem:[#allocation2 + $0x40] sm:$0xff] }
  0x3d   :  { %v91_v16 = vld [vmem:[#allocation2 + $0x138] sm:$0xff]  ;;  %v92_v18 = vld [vmem:[#allocation2 + $0x140] sm:$0xff]  ;;  %v61_v19 = vld [vmem:[#allocation2 + $0x48] sm:$0xff]  ;;  %p1158_p13 = por %p1157_p12, %p1156_p11 }
  0x3e   :  { %v93_v20 = vld [vmem:[#allocation2 + $0x148] sm:$0xff]  ;;  %v62_v21 = vld [vmem:[#allocation2 + $0x50] sm:$0xff]  ;;  %v63_v23 = vld [vmem:[#allocation2 + $0x58] sm:$0xff] }
  0x3f   :  { %985 = vmatmul.mubr.msk.f32.gmra.mrb[2].mxu0 %vm124_vm0, %v55_v7  ;;  %1033 = vmatmul.mubr.msk.f32.gmra.mrb[2].mxu1 %vm124_vm0, %v87_v8  ;;  %v94_v22 = vld [vmem:[#allocation2 + $0x150] sm:$0xff]  ;;  %v95_v24 = vld [vmem:[#allocation2 + $0x158] sm:$0xff]  ;;  %v64_v25 = vld [vmem:[#allocation2 + $0x60] sm:$0xff]  ;;  %p1159_p0 = pnand %p1158_p13, %p1152_p10 }
  0x40   :  { %987 = vmatprep.mubr.msk.f32.mxu0 %vm124_vm0, %v56_v9  ;;  %1035 = vmatprep.mubr.msk.f32.mxu1 %vm124_vm0, %v88_v10  ;;  %v96_v26 = vld [vmem:[#allocation2 + $0x160] sm:$0xff]  ;;  %v65_v27 = vld [vmem:[#allocation2 + $0x68] sm:$0xff]  ;;  %v66_v29 = vld [vmem:[#allocation2 + $0x70] sm:$0xff] }
  0x41   :  { %v97_v28 = vld [vmem:[#allocation2 + $0x168] sm:$0xff]  ;;  %v98_v30 = vld [vmem:[#allocation2 + $0x170] sm:$0xff]  ;;  %v67_v31 = vld [vmem:[#allocation2 + $0x78] sm:$0xff] }
  0x42   :  { %v99_v32 = vld [vmem:[#allocation2 + $0x178] sm:$0xff]  ;;  %v68_v33 = vld [vmem:[#allocation2 + $0x80] sm:$0xff]  ;;  %v69_v35 = vld [vmem:[#allocation2 + $0x88] sm:$0xff] }
  0x43   :  { %988 = vmatmul.mubr.msk.f32.gmra.mrb[4].mxu0 %vm124_vm0, %v57_v11  ;;  %1036 = vmatmul.mubr.msk.f32.gmra.mrb[4].mxu1 %vm124_vm0, %v89_v12  ;;  %v100_v34 = vld [vmem:[#allocation2 + $0x180] sm:$0xff]  ;;  %v101_v36 = vld [vmem:[#allocation2 + $0x188] sm:$0xff]  ;;  %v70_v37 = vld [vmem:[#allocation2 + $0x90] sm:$0xff] }
  0x44   :  { %990 = vmatprep.mubr.msk.f32.mxu0 %vm124_vm0, %v58_v13  ;;  %1038 = vmatprep.mubr.msk.f32.mxu1 %vm124_vm0, %v90_v14  ;;  %v102_v38 = vld [vmem:[#allocation2 + $0x190] sm:$0xff]  ;;  %v71_v39 = vld [vmem:[#allocation2 + $0x98] sm:$0xff]  ;;  %v72_v41 = vld [vmem:[#allocation2 + $0xa0] sm:$0xff] }
  0x45   :  { %v103_v40 = vld [vmem:[#allocation2 + $0x198] sm:$0xff]  ;;  %v104_v42 = vld [vmem:[#allocation2 + $0x1a0] sm:$0xff]  ;;  %v73_v43 = vld [vmem:[#allocation2 + $0xa8] sm:$0xff] }
  0x46   :  { %v105_v44 = vld [vmem:[#allocation2 + $0x1a8] sm:$0xff]  ;;  %v74_v45 = vld [vmem:[#allocation2 + $0xb0] sm:$0xff]  ;;  %v75_v47 = vld [vmem:[#allocation2 + $0xb8] sm:$0xff] }
  0x47   :  { %991 = vmatmul.mubr.msk.f32.gmra.mrb[6].mxu0 %vm124_vm0, %v59_v15  ;;  %1039 = vmatmul.mubr.msk.f32.gmra.mrb[6].mxu1 %vm124_vm0, %v91_v16  ;;  %v106_v46 = vld [vmem:[#allocation2 + $0x1b0] sm:$0xff]  ;;  %v107_v48 = vld [vmem:[#allocation2 + $0x1b8] sm:$0xff]  ;;  %v76_v49 = vld [vmem:[#allocation2 + $0xc0] sm:$0xff] }
  0x48   :  { %993 = vmatprep.mubr.msk.f32.mxu0 %vm124_vm0, %v60_v17  ;;  %1041 = vmatprep.mubr.msk.f32.mxu1 %vm124_vm0, %v92_v18  ;;  %v108_v50 = vld [vmem:[#allocation2 + $0x1c0] sm:$0xff]  ;;  %v77_v51 = vld [vmem:[#allocation2 + $0xc8] sm:$0xff]  ;;  %v78_v53 = vld [vmem:[#allocation2 + $0xd0] sm:$0xff] }
  0x49   :  { %v109_v52 = vld [vmem:[#allocation2 + $0x1c8] sm:$0xff]  ;;  %v110_v54 = vld [vmem:[#allocation2 + $0x1d0] sm:$0xff]  ;;  %v79_v55 = vld [vmem:[#allocation2 + $0xd8] sm:$0xff] }
  0x4a   :  { %v111_v56 = vld [vmem:[#allocation2 + $0x1d8] sm:$0xff]  ;;  %v80_v57 = vld [vmem:[#allocation2 + $0xe0] sm:$0xff]  ;;  %v81_v59 = vld [vmem:[#allocation2 + $0xe8] sm:$0xff] }
  0x4b   :  { %994 = vmatmul.mubr.msk.f32.gmra.mrb[8].mxu0 %vm124_vm0, %v61_v19  ;;  %1042 = vmatmul.mubr.msk.f32.gmra.mrb[8].mxu1 %vm124_vm0, %v93_v20  ;;  %v112_v58 = vld [vmem:[#allocation2 + $0x1e0] sm:$0xff]  ;;  %v113_v60 = vld [vmem:[#allocation2 + $0x1e8] sm:$0xff]  ;;  %v82_v61 = vld [vmem:[#allocation2 + $0xf0] sm:$0xff] }
  0x4c   :  { %996 = vmatprep.mubr.msk.f32.mxu0 %vm124_vm0, %v62_v21  ;;  %1044 = vmatprep.mubr.msk.f32.mxu1 %vm124_vm0, %v94_v22  ;;  %v114_v62 = vld [vmem:[#allocation2 + $0x1f0] sm:$0xff]  ;;  %v83_v63 = vld [vmem:[#allocation2 + $0xf8] sm:$0xff]  ;;  %v1315_v1 = vld [vmem:[#allocation7] ss:$0 sm:$0xff] }
  0x4d   :  { %v115_v0 = vld [vmem:[#allocation2 + $0x1f8] sm:$0xff] }
  0x4f   :  { %997 = vmatmul.mubr.msk.f32.gmra.mrb[10].mxu0 %vm124_vm0, %v63_v23  ;;  %1045 = vmatmul.mubr.msk.f32.gmra.mrb[10].mxu1 %vm124_vm0, %v95_v24 }
  0x50   :  { %999 = vmatprep.mubr.msk.f32.mxu0 %vm124_vm0, %v64_v25  ;;  %1047 = vmatprep.mubr.msk.f32.mxu1 %vm124_vm0, %v96_v26 }
  0x53   :  { %1000 = vmatmul.mubr.msk.f32.gmra.mrb[12].mxu0 %vm124_vm0, %v65_v27  ;;  %1048 = vmatmul.mubr.msk.f32.gmra.mrb[12].mxu1 %vm124_vm0, %v97_v28 }
  0x54   :  { %1002 = vmatprep.mubr.msk.f32.mxu0 %vm124_vm0, %v66_v29  ;;  %1050 = vmatprep.mubr.msk.f32.mxu1 %vm124_vm0, %v98_v30 }
  0x57   :  { %1003 = vmatmul.mubr.msk.f32.gmra.mrb[14].mxu0 %vm124_vm0, %v67_v31  ;;  %1051 = vmatmul.mubr.msk.f32.gmra.mrb[14].mxu1 %vm124_vm0, %v99_v32 }
  0x58   :  { %1005 = vmatprep.mubr.msk.f32.mxu0 %vm124_vm0, %v68_v33  ;;  %1053 = vmatprep.mubr.msk.f32.mxu1 %vm124_vm0, %v100_v34 }
  0x5b   :  { %1006 = vmatmul.mubr.msk.f32.gmra.mrb[16].mxu0 %vm124_vm0, %v69_v35  ;;  %1054 = vmatmul.mubr.msk.f32.gmra.mrb[16].mxu1 %vm124_vm0, %v101_v36 }
  0x5c   :  { %1008 = vmatprep.mubr.msk.f32.mxu0 %vm124_vm0, %v70_v37  ;;  %1056 = vmatprep.mubr.msk.f32.mxu1 %vm124_vm0, %v102_v38 }
  0x5f   :  { %1009 = vmatmul.mubr.msk.f32.gmra.mrb[18].mxu0 %vm124_vm0, %v71_v39  ;;  %1057 = vmatmul.mubr.msk.f32.gmra.mrb[18].mxu1 %vm124_vm0, %v103_v40 }
  0x60   :  { %1011 = vmatprep.mubr.msk.f32.mxu0 %vm124_vm0, %v72_v41  ;;  %1059 = vmatprep.mubr.msk.f32.mxu1 %vm124_vm0, %v104_v42 }
  0x63   :  { %1012 = vmatmul.mubr.msk.f32.gmra.mrb[20].mxu0 %vm124_vm0, %v73_v43  ;;  %1060 = vmatmul.mubr.msk.f32.gmra.mrb[20].mxu1 %vm124_vm0, %v105_v44 }
  0x64   :  { %1014 = vmatprep.mubr.msk.f32.mxu0 %vm124_vm0, %v74_v45  ;;  %1062 = vmatprep.mubr.msk.f32.mxu1 %vm124_vm0, %v106_v46 }
  0x67   :  { %1015 = vmatmul.mubr.msk.f32.gmra.mrb[22].mxu0 %vm124_vm0, %v75_v47  ;;  %1063 = vmatmul.mubr.msk.f32.gmra.mrb[22].mxu1 %vm124_vm0, %v107_v48 }
  0x68   :  { %1017 = vmatprep.mubr.msk.f32.mxu0 %vm124_vm0, %v76_v49  ;;  %1065 = vmatprep.mubr.msk.f32.mxu1 %vm124_vm0, %v108_v50 }
  0x6b   :  { %1018 = vmatmul.mubr.msk.f32.gmra.mrb[24].mxu0 %vm124_vm0, %v77_v51  ;;  %1066 = vmatmul.mubr.msk.f32.gmra.mrb[24].mxu1 %vm124_vm0, %v109_v52 }
  0x6c   :  { %1020 = vmatprep.mubr.msk.f32.mxu0 %vm124_vm0, %v78_v53  ;;  %1068 = vmatprep.mubr.msk.f32.mxu1 %vm124_vm0, %v110_v54 }
  0x6f   :  { %1021 = vmatmul.mubr.msk.f32.gmra.mrb[26].mxu0 %vm124_vm0, %v79_v55  ;;  %1069 = vmatmul.mubr.msk.f32.gmra.mrb[26].mxu1 %vm124_vm0, %v111_v56 }
  0x70   :  { %1023 = vmatprep.mubr.msk.f32.mxu0 %vm124_vm0, %v80_v57  ;;  %1071 = vmatprep.mubr.msk.f32.mxu1 %vm124_vm0, %v112_v58 }
  0x73   :  { %1024 = vmatmul.mubr.msk.f32.gmra.mrb[28].mxu0 %vm124_vm0, %v81_v59  ;;  %1072 = vmatmul.mubr.msk.f32.gmra.mrb[28].mxu1 %vm124_vm0, %v113_v60 }
  0x74   :  { %1026 = vmatprep.mubr.msk.f32.mxu0 %vm124_vm0, %v82_v61  ;;  %1074 = vmatprep.mubr.msk.f32.mxu1 %vm124_vm0, %v114_v62 }
  0x77   :  { %1027 = vmatmul.mubr.msk.f32.gmra.mrb[30].mxu0 %vm124_vm0, %v83_v63  ;;  %1075 = vmatmul.mubr.msk.f32.gmra.mrb[30].mxu1 %vm124_vm0, %v115_v0 }
 0x10e   :  { %v983_v2 = vpop.f32.mrb[0].mxu0  ;;  %v1031_v3 = vpop.f32.mrb[0].mxu1 }
 0x10f   :  { %v389_v4 = vadd.f32 %v983_v2, %v1315_v1  ;;  %v549_v5 = vadd.f32 %v1031_v3, %v1315_v1  ;;  %v383_v6 = vpop.f32.mrb[1].mxu0  ;;  %v543_v7 = vpop.f32.mrb[1].mxu1 }
 0x110   :  { %v384_v8 = vadd.f32 %v1315_v1, %v383_v6  ;;  %v544_v9 = vadd.f32 %v1315_v1, %v543_v7 }
 0x111   :  { %v703_v10 = vmax.f32 %v389_v4, 0.0  ;;  %v735_v11 = vmax.f32 %v549_v5, 0.0 }
 0x112   :  { %v702_v12 = vmax.f32 %v384_v8, 0.0  ;;  %v734_v13 = vmax.f32 %v544_v9, 0.0  ;;  %v986_v14 = vpop.f32.mrb[2].mxu0  ;;  %v1034_v15 = vpop.f32.mrb[2].mxu1 }
 0x113   :  { %768 = vst.msk [vmem:[#allocation8 + $0x8] sm:$0xff] %vm766_vm1, %v703_v10  ;;  %800 = vst.msk [vmem:[#allocation8 + $0x108] sm:$0xff] %vm766_vm1, %v735_v11  ;;  %v399_v16 = vadd.f32 %v986_v14, %v1315_v1  ;;  %v559_v17 = vadd.f32 %v1034_v15, %v1315_v1  ;;  %v393_v18 = vpop.f32.mrb[3].mxu0  ;;  %v553_v19 = vpop.f32.mrb[3].mxu1 }
 0x114   :  { %767 = vst.msk [vmem:[#allocation8] sm:$0xff] %vm766_vm1, %v702_v12  ;;  %799 = vst.msk [vmem:[#allocation8 + $0x100] sm:$0xff] %vm766_vm1, %v734_v13  ;;  %v394_v20 = vadd.f32 %v1315_v1, %v393_v18  ;;  %v554_v21 = vadd.f32 %v1315_v1, %v553_v19 }
 0x115   :  { %v705_v22 = vmax.f32 %v399_v16, 0.0  ;;  %v737_v23 = vmax.f32 %v559_v17, 0.0 }
 0x116   :  { %v704_v24 = vmax.f32 %v394_v20, 0.0  ;;  %v736_v25 = vmax.f32 %v554_v21, 0.0  ;;  %v989_v26 = vpop.f32.mrb[4].mxu0  ;;  %v1037_v27 = vpop.f32.mrb[4].mxu1 }
 0x117   :  { %770 = vst.msk [vmem:[#allocation8 + $0x18] sm:$0xff] %vm766_vm1, %v705_v22  ;;  %802 = vst.msk [vmem:[#allocation8 + $0x118] sm:$0xff] %vm766_vm1, %v737_v23  ;;  %v409_v28 = vadd.f32 %v989_v26, %v1315_v1  ;;  %v569_v29 = vadd.f32 %v1037_v27, %v1315_v1  ;;  %v403_v30 = vpop.f32.mrb[5].mxu0  ;;  %v563_v31 = vpop.f32.mrb[5].mxu1 }
 0x118   :  { %769 = vst.msk [vmem:[#allocation8 + $0x10] sm:$0xff] %vm766_vm1, %v704_v24  ;;  %801 = vst.msk [vmem:[#allocation8 + $0x110] sm:$0xff] %vm766_vm1, %v736_v25  ;;  %v404_v32 = vadd.f32 %v1315_v1, %v403_v30  ;;  %v564_v33 = vadd.f32 %v1315_v1, %v563_v31 }
 0x119   :  { %v707_v34 = vmax.f32 %v409_v28, 0.0  ;;  %v739_v35 = vmax.f32 %v569_v29, 0.0 }
 0x11a   :  { %v706_v36 = vmax.f32 %v404_v32, 0.0  ;;  %v738_v37 = vmax.f32 %v564_v33, 0.0  ;;  %v992_v38 = vpop.f32.mrb[6].mxu0  ;;  %v1040_v39 = vpop.f32.mrb[6].mxu1 }
 0x11b   :  { %772 = vst.msk [vmem:[#allocation8 + $0x28] sm:$0xff] %vm766_vm1, %v707_v34  ;;  %804 = vst.msk [vmem:[#allocation8 + $0x128] sm:$0xff] %vm766_vm1, %v739_v35  ;;  %v419_v40 = vadd.f32 %v992_v38, %v1315_v1  ;;  %v579_v41 = vadd.f32 %v1040_v39, %v1315_v1  ;;  %v413_v42 = vpop.f32.mrb[7].mxu0  ;;  %v573_v43 = vpop.f32.mrb[7].mxu1 }
 0x11c   :  { %771 = vst.msk [vmem:[#allocation8 + $0x20] sm:$0xff] %vm766_vm1, %v706_v36  ;;  %803 = vst.msk [vmem:[#allocation8 + $0x120] sm:$0xff] %vm766_vm1, %v738_v37  ;;  %v414_v44 = vadd.f32 %v1315_v1, %v413_v42  ;;  %v574_v45 = vadd.f32 %v1315_v1, %v573_v43 }
 0x11d   :  { %v709_v46 = vmax.f32 %v419_v40, 0.0  ;;  %v741_v47 = vmax.f32 %v579_v41, 0.0 }
 0x11e   :  { %v708_v48 = vmax.f32 %v414_v44, 0.0  ;;  %v740_v49 = vmax.f32 %v574_v45, 0.0  ;;  %v995_v50 = vpop.f32.mrb[8].mxu0  ;;  %v1043_v51 = vpop.f32.mrb[8].mxu1 }
 0x11f   :  { %774 = vst.msk [vmem:[#allocation8 + $0x38] sm:$0xff] %vm766_vm1, %v709_v46  ;;  %806 = vst.msk [vmem:[#allocation8 + $0x138] sm:$0xff] %vm766_vm1, %v741_v47  ;;  %v429_v52 = vadd.f32 %v995_v50, %v1315_v1  ;;  %v589_v53 = vadd.f32 %v1043_v51, %v1315_v1  ;;  %v423_v54 = vpop.f32.mrb[9].mxu0  ;;  %v583_v55 = vpop.f32.mrb[9].mxu1 }
 0x120   :  { %773 = vst.msk [vmem:[#allocation8 + $0x30] sm:$0xff] %vm766_vm1, %v708_v48  ;;  %805 = vst.msk [vmem:[#allocation8 + $0x130] sm:$0xff] %vm766_vm1, %v740_v49  ;;  %v424_v56 = vadd.f32 %v1315_v1, %v423_v54  ;;  %v584_v57 = vadd.f32 %v1315_v1, %v583_v55 }
 0x121   :  { %v711_v58 = vmax.f32 %v429_v52, 0.0  ;;  %v743_v59 = vmax.f32 %v589_v53, 0.0 }
 0x122   :  { %v710_v60 = vmax.f32 %v424_v56, 0.0  ;;  %v742_v61 = vmax.f32 %v584_v57, 0.0  ;;  %v998_v62 = vpop.f32.mrb[10].mxu0  ;;  %v1046_v63 = vpop.f32.mrb[10].mxu1 }
 0x123   :  { %776 = vst.msk [vmem:[#allocation8 + $0x48] sm:$0xff] %vm766_vm1, %v711_v58  ;;  %808 = vst.msk [vmem:[#allocation8 + $0x148] sm:$0xff] %vm766_vm1, %v743_v59  ;;  %v439_v0 = vadd.f32 %v998_v62, %v1315_v1  ;;  %v599_v2 = vadd.f32 %v1046_v63, %v1315_v1  ;;  %v433_v3 = vpop.f32.mrb[11].mxu0  ;;  %v593_v4 = vpop.f32.mrb[11].mxu1 }
 0x124   :  { %775 = vst.msk [vmem:[#allocation8 + $0x40] sm:$0xff] %vm766_vm1, %v710_v60  ;;  %807 = vst.msk [vmem:[#allocation8 + $0x140] sm:$0xff] %vm766_vm1, %v742_v61  ;;  %v434_v5 = vadd.f32 %v1315_v1, %v433_v3  ;;  %v594_v6 = vadd.f32 %v1315_v1, %v593_v4 }
 0x125   :  { %v713_v7 = vmax.f32 %v439_v0, 0.0  ;;  %v745_v8 = vmax.f32 %v599_v2, 0.0 }
 0x126   :  { %v712_v9 = vmax.f32 %v434_v5, 0.0  ;;  %v744_v10 = vmax.f32 %v594_v6, 0.0  ;;  %v1001_v11 = vpop.f32.mrb[12].mxu0  ;;  %v1049_v12 = vpop.f32.mrb[12].mxu1 }
 0x127   :  { %778 = vst.msk [vmem:[#allocation8 + $0x58] sm:$0xff] %vm766_vm1, %v713_v7  ;;  %810 = vst.msk [vmem:[#allocation8 + $0x158] sm:$0xff] %vm766_vm1, %v745_v8  ;;  %v449_v13 = vadd.f32 %v1001_v11, %v1315_v1  ;;  %v609_v14 = vadd.f32 %v1049_v12, %v1315_v1  ;;  %v443_v15 = vpop.f32.mrb[13].mxu0  ;;  %v603_v16 = vpop.f32.mrb[13].mxu1 }
 0x128   :  { %777 = vst.msk [vmem:[#allocation8 + $0x50] sm:$0xff] %vm766_vm1, %v712_v9  ;;  %809 = vst.msk [vmem:[#allocation8 + $0x150] sm:$0xff] %vm766_vm1, %v744_v10  ;;  %v444_v17 = vadd.f32 %v1315_v1, %v443_v15  ;;  %v604_v18 = vadd.f32 %v1315_v1, %v603_v16 }
 0x129   :  { %v715_v19 = vmax.f32 %v449_v13, 0.0  ;;  %v747_v20 = vmax.f32 %v609_v14, 0.0 }
 0x12a   :  { %v714_v21 = vmax.f32 %v444_v17, 0.0  ;;  %v746_v22 = vmax.f32 %v604_v18, 0.0  ;;  %v1004_v23 = vpop.f32.mrb[14].mxu0  ;;  %v1052_v24 = vpop.f32.mrb[14].mxu1 }
 0x12b   :  { %780 = vst.msk [vmem:[#allocation8 + $0x68] sm:$0xff] %vm766_vm1, %v715_v19  ;;  %812 = vst.msk [vmem:[#allocation8 + $0x168] sm:$0xff] %vm766_vm1, %v747_v20  ;;  %v459_v25 = vadd.f32 %v1004_v23, %v1315_v1  ;;  %v619_v26 = vadd.f32 %v1052_v24, %v1315_v1  ;;  %v453_v27 = vpop.f32.mrb[15].mxu0  ;;  %v613_v28 = vpop.f32.mrb[15].mxu1 }
 0x12c   :  { %779 = vst.msk [vmem:[#allocation8 + $0x60] sm:$0xff] %vm766_vm1, %v714_v21  ;;  %811 = vst.msk [vmem:[#allocation8 + $0x160] sm:$0xff] %vm766_vm1, %v746_v22  ;;  %v454_v29 = vadd.f32 %v1315_v1, %v453_v27  ;;  %v614_v30 = vadd.f32 %v1315_v1, %v613_v28 }
 0x12d   :  { %v717_v31 = vmax.f32 %v459_v25, 0.0  ;;  %v749_v32 = vmax.f32 %v619_v26, 0.0 }
 0x12e   :  { %v716_v33 = vmax.f32 %v454_v29, 0.0  ;;  %v748_v34 = vmax.f32 %v614_v30, 0.0  ;;  %v1007_v35 = vpop.f32.mrb[16].mxu0  ;;  %v1055_v36 = vpop.f32.mrb[16].mxu1 }
 0x12f   :  { %782 = vst.msk [vmem:[#allocation8 + $0x78] sm:$0xff] %vm766_vm1, %v717_v31  ;;  %814 = vst.msk [vmem:[#allocation8 + $0x178] sm:$0xff] %vm766_vm1, %v749_v32  ;;  %v469_v37 = vadd.f32 %v1007_v35, %v1315_v1  ;;  %v629_v38 = vadd.f32 %v1055_v36, %v1315_v1  ;;  %v463_v39 = vpop.f32.mrb[17].mxu0  ;;  %v623_v40 = vpop.f32.mrb[17].mxu1 }
 0x130   :  { %781 = vst.msk [vmem:[#allocation8 + $0x70] sm:$0xff] %vm766_vm1, %v716_v33  ;;  %813 = vst.msk [vmem:[#allocation8 + $0x170] sm:$0xff] %vm766_vm1, %v748_v34  ;;  %v464_v41 = vadd.f32 %v1315_v1, %v463_v39  ;;  %v624_v42 = vadd.f32 %v1315_v1, %v623_v40 }
 0x131   :  { %v719_v43 = vmax.f32 %v469_v37, 0.0  ;;  %v751_v44 = vmax.f32 %v629_v38, 0.0 }
 0x132   :  { %v718_v45 = vmax.f32 %v464_v41, 0.0  ;;  %v750_v46 = vmax.f32 %v624_v42, 0.0  ;;  %v1010_v47 = vpop.f32.mrb[18].mxu0  ;;  %v1058_v48 = vpop.f32.mrb[18].mxu1 }
 0x133   :  { %784 = vst.msk [vmem:[#allocation8 + $0x88] sm:$0xff] %vm766_vm1, %v719_v43  ;;  %816 = vst.msk [vmem:[#allocation8 + $0x188] sm:$0xff] %vm766_vm1, %v751_v44  ;;  %v479_v49 = vadd.f32 %v1010_v47, %v1315_v1  ;;  %v639_v50 = vadd.f32 %v1058_v48, %v1315_v1  ;;  %v473_v51 = vpop.f32.mrb[19].mxu0  ;;  %v633_v52 = vpop.f32.mrb[19].mxu1 }
 0x134   :  { %783 = vst.msk [vmem:[#allocation8 + $0x80] sm:$0xff] %vm766_vm1, %v718_v45  ;;  %815 = vst.msk [vmem:[#allocation8 + $0x180] sm:$0xff] %vm766_vm1, %v750_v46  ;;  %v474_v53 = vadd.f32 %v1315_v1, %v473_v51  ;;  %v634_v54 = vadd.f32 %v1315_v1, %v633_v52 }
 0x135   :  { %v721_v55 = vmax.f32 %v479_v49, 0.0  ;;  %v753_v56 = vmax.f32 %v639_v50, 0.0 }
 0x136   :  { %v720_v57 = vmax.f32 %v474_v53, 0.0  ;;  %v752_v58 = vmax.f32 %v634_v54, 0.0  ;;  %v1013_v59 = vpop.f32.mrb[20].mxu0  ;;  %v1061_v60 = vpop.f32.mrb[20].mxu1 }
 0x137   :  { %786 = vst.msk [vmem:[#allocation8 + $0x98] sm:$0xff] %vm766_vm1, %v721_v55  ;;  %818 = vst.msk [vmem:[#allocation8 + $0x198] sm:$0xff] %vm766_vm1, %v753_v56  ;;  %v489_v61 = vadd.f32 %v1013_v59, %v1315_v1  ;;  %v649_v62 = vadd.f32 %v1061_v60, %v1315_v1  ;;  %v483_v63 = vpop.f32.mrb[21].mxu0  ;;  %v643_v0 = vpop.f32.mrb[21].mxu1 }
 0x138   :  { %785 = vst.msk [vmem:[#allocation8 + $0x90] sm:$0xff] %vm766_vm1, %v720_v57  ;;  %817 = vst.msk [vmem:[#allocation8 + $0x190] sm:$0xff] %vm766_vm1, %v752_v58  ;;  %v484_v2 = vadd.f32 %v1315_v1, %v483_v63  ;;  %v644_v3 = vadd.f32 %v1315_v1, %v643_v0 }
 0x139   :  { %v723_v4 = vmax.f32 %v489_v61, 0.0  ;;  %v755_v5 = vmax.f32 %v649_v62, 0.0 }
 0x13a   :  { %v722_v6 = vmax.f32 %v484_v2, 0.0  ;;  %v754_v7 = vmax.f32 %v644_v3, 0.0  ;;  %v1016_v8 = vpop.f32.mrb[22].mxu0  ;;  %v1064_v9 = vpop.f32.mrb[22].mxu1 }
 0x13b   :  { %788 = vst.msk [vmem:[#allocation8 + $0xa8] sm:$0xff] %vm766_vm1, %v723_v4  ;;  %820 = vst.msk [vmem:[#allocation8 + $0x1a8] sm:$0xff] %vm766_vm1, %v755_v5  ;;  %v499_v10 = vadd.f32 %v1016_v8, %v1315_v1  ;;  %v659_v11 = vadd.f32 %v1064_v9, %v1315_v1  ;;  %v493_v12 = vpop.f32.mrb[23].mxu0  ;;  %v653_v13 = vpop.f32.mrb[23].mxu1 }
 0x13c   :  { %787 = vst.msk [vmem:[#allocation8 + $0xa0] sm:$0xff] %vm766_vm1, %v722_v6  ;;  %819 = vst.msk [vmem:[#allocation8 + $0x1a0] sm:$0xff] %vm766_vm1, %v754_v7  ;;  %v494_v14 = vadd.f32 %v1315_v1, %v493_v12  ;;  %v654_v15 = vadd.f32 %v1315_v1, %v653_v13 }
 0x13d   :  { %v725_v16 = vmax.f32 %v499_v10, 0.0  ;;  %v757_v17 = vmax.f32 %v659_v11, 0.0 }
 0x13e   :  { %v724_v18 = vmax.f32 %v494_v14, 0.0  ;;  %v756_v19 = vmax.f32 %v654_v15, 0.0  ;;  %v1019_v20 = vpop.f32.mrb[24].mxu0  ;;  %v1067_v21 = vpop.f32.mrb[24].mxu1 }
 0x13f   :  { %790 = vst.msk [vmem:[#allocation8 + $0xb8] sm:$0xff] %vm766_vm1, %v725_v16  ;;  %822 = vst.msk [vmem:[#allocation8 + $0x1b8] sm:$0xff] %vm766_vm1, %v757_v17  ;;  %v509_v22 = vadd.f32 %v1019_v20, %v1315_v1  ;;  %v669_v23 = vadd.f32 %v1067_v21, %v1315_v1  ;;  %v503_v24 = vpop.f32.mrb[25].mxu0  ;;  %v663_v25 = vpop.f32.mrb[25].mxu1 }
 0x140   :  { %789 = vst.msk [vmem:[#allocation8 + $0xb0] sm:$0xff] %vm766_vm1, %v724_v18  ;;  %821 = vst.msk [vmem:[#allocation8 + $0x1b0] sm:$0xff] %vm766_vm1, %v756_v19  ;;  %v504_v26 = vadd.f32 %v1315_v1, %v503_v24  ;;  %v664_v27 = vadd.f32 %v1315_v1, %v663_v25 }
 0x141   :  { %v727_v28 = vmax.f32 %v509_v22, 0.0  ;;  %v759_v29 = vmax.f32 %v669_v23, 0.0 }
 0x142   :  { %v726_v30 = vmax.f32 %v504_v26, 0.0  ;;  %v758_v31 = vmax.f32 %v664_v27, 0.0  ;;  %v1022_v32 = vpop.f32.mrb[26].mxu0  ;;  %v1070_v33 = vpop.f32.mrb[26].mxu1 }
 0x143   :  { %792 = vst.msk [vmem:[#allocation8 + $0xc8] sm:$0xff] %vm766_vm1, %v727_v28  ;;  %824 = vst.msk [vmem:[#allocation8 + $0x1c8] sm:$0xff] %vm766_vm1, %v759_v29  ;;  %v519_v34 = vadd.f32 %v1022_v32, %v1315_v1  ;;  %v679_v35 = vadd.f32 %v1070_v33, %v1315_v1  ;;  %v513_v36 = vpop.f32.mrb[27].mxu0  ;;  %v673_v37 = vpop.f32.mrb[27].mxu1 }
 0x144   :  { %791 = vst.msk [vmem:[#allocation8 + $0xc0] sm:$0xff] %vm766_vm1, %v726_v30  ;;  %823 = vst.msk [vmem:[#allocation8 + $0x1c0] sm:$0xff] %vm766_vm1, %v758_v31  ;;  %v514_v38 = vadd.f32 %v1315_v1, %v513_v36  ;;  %v674_v39 = vadd.f32 %v1315_v1, %v673_v37 }
 0x145   :  { %v729_v40 = vmax.f32 %v519_v34, 0.0  ;;  %v761_v41 = vmax.f32 %v679_v35, 0.0 }
 0x146   :  { %v728_v42 = vmax.f32 %v514_v38, 0.0  ;;  %v760_v43 = vmax.f32 %v674_v39, 0.0  ;;  %v1025_v44 = vpop.f32.mrb[28].mxu0  ;;  %v1073_v45 = vpop.f32.mrb[28].mxu1 }
 0x147   :  { %794 = vst.msk [vmem:[#allocation8 + $0xd8] sm:$0xff] %vm766_vm1, %v729_v40  ;;  %826 = vst.msk [vmem:[#allocation8 + $0x1d8] sm:$0xff] %vm766_vm1, %v761_v41  ;;  %v529_v46 = vadd.f32 %v1025_v44, %v1315_v1  ;;  %v689_v47 = vadd.f32 %v1073_v45, %v1315_v1  ;;  %v523_v48 = vpop.f32.mrb[29].mxu0  ;;  %v683_v49 = vpop.f32.mrb[29].mxu1 }
 0x148   :  { %793 = vst.msk [vmem:[#allocation8 + $0xd0] sm:$0xff] %vm766_vm1, %v728_v42  ;;  %825 = vst.msk [vmem:[#allocation8 + $0x1d0] sm:$0xff] %vm766_vm1, %v760_v43  ;;  %v524_v50 = vadd.f32 %v1315_v1, %v523_v48  ;;  %v684_v51 = vadd.f32 %v1315_v1, %v683_v49 }
 0x149   :  { %v731_v52 = vmax.f32 %v529_v46, 0.0  ;;  %v763_v53 = vmax.f32 %v689_v47, 0.0 }
 0x14a   :  { %v730_v54 = vmax.f32 %v524_v50, 0.0  ;;  %v762_v55 = vmax.f32 %v684_v51, 0.0  ;;  %v1028_v56 = vpop.f32.mrb[30].mxu0  ;;  %v1076_v57 = vpop.f32.mrb[30].mxu1 }
 0x14b   :  { %796 = vst.msk [vmem:[#allocation8 + $0xe8] sm:$0xff] %vm766_vm1, %v731_v52  ;;  %828 = vst.msk [vmem:[#allocation8 + $0x1e8] sm:$0xff] %vm766_vm1, %v763_v53  ;;  %v539_v58 = vadd.f32 %v1028_v56, %v1315_v1  ;;  %v699_v59 = vadd.f32 %v1076_v57, %v1315_v1  ;;  %v533_v60 = vpop.f32.mrb[31].mxu0  ;;  %v693_v61 = vpop.f32.mrb[31].mxu1 }
 0x14c   :  { %795 = vst.msk [vmem:[#allocation8 + $0xe0] sm:$0xff] %vm766_vm1, %v730_v54  ;;  %827 = vst.msk [vmem:[#allocation8 + $0x1e0] sm:$0xff] %vm766_vm1, %v762_v55  ;;  %v534_v62 = vadd.f32 %v1315_v1, %v533_v60  ;;  %v694_v63 = vadd.f32 %v1315_v1, %v693_v61 }
 0x14d   :  { %v733_v0 = vmax.f32 %v539_v58, 0.0  ;;  %v765_v2 = vmax.f32 %v699_v59, 0.0 }
 0x14e   :  { %v732_v3 = vmax.f32 %v534_v62, 0.0  ;;  %v764_v4 = vmax.f32 %v694_v63, 0.0 }
 0x14f   :  { %798 = vst.msk [vmem:[#allocation8 + $0xf8] sm:$0xff] %vm766_vm1, %v733_v0  ;;  %830 = vst.msk [vmem:[#allocation8 + $0x1f8] sm:$0xff] %vm766_vm1, %v765_v2 }
 0x150   :  { %797 = vst.msk [vmem:[#allocation8 + $0xf0] sm:$0xff] %vm766_vm1, %v732_v3  ;;  %829 = vst.msk [vmem:[#allocation8 + $0x1f0] sm:$0xff] %vm766_vm1, %v764_v4 }
 0x151   :  { %1162 = shalt.err (!%p1159_p0)
}
 0x152   :  { %s1163_s26 = scalar_lea.hbm %s1463_s3, 8192 }
 0x153   :  { %p1164_p1 = scmp.ne.s32.totalorder %s1463_s3, %s1163_s26  ;;  %p1167_p2 = scmp.lt.u32.totalorder %s1163_s26, %s1463_s3 }
 0x155   :  { %p1169_p3 = pnand %p1167_p2, %p1164_p1 }
 0x157   :  { %1172 = shalt.err (!%p1169_p3)
}
 0x158   :  { %842 = dma.vmem_to_hbm [thread:$0]  %s837_s22, 8192, %s1463_s3, [#allocation4], %s1181_s1, %s1181_s1, %s1182_s7  }
 0x159   :  { %1177 = dma.done.wait [#allocation4], 8192  }
 0x15a   :  { %1178 = vsyncadd [#allocation4], 4294959104 }
 0x15b   :  { %846 = vsyncpa [#allocation3], 1 }
 0x15c   :  { %847 = vsyncpa [#allocation6], 1 }
 0x15d   :  { %848 = vsyncpa [#allocation4], 1 }

</bundles_post_ra>
